<compile_context>
chip_gen: v7x
topology: tpu7x:2x2x1
jax: 0.10.0
libtpu: 0.0.40
codegen_flags: <defaults>
</compile_context>

<pallas_src>
import functools

import jax
import jax.numpy as jnp
from jax import lax
from jax.experimental import pallas as pl
from jax.experimental.pallas import tpu as pltpu

BN_EPS = 1e-5


# ---------------------------------------------------------------------------
# Kernels
# ---------------------------------------------------------------------------

def _fused_kernel(x_ref, w_ref, g_ref, beta_ref, o_ref, *, inv_n):
    """Single-pass Linear+BN for problems whose full X / y fit in VMEM.

    Grid: (out_f tiles,). X has a constant-index full block, so it is DMA'd from
    HBM once and stays VMEM-resident across channel tiles.
    """
    y = jnp.dot(x_ref[...], w_ref[...], preferred_element_type=jnp.float32)
    # Padded rows of X are exactly zero (and the Linear bias is dropped -- it cancels
    # under batch-norm), so they contribute 0 to both sums; divide by the true N.
    mean = jnp.sum(y, axis=0, keepdims=True) * inv_n                 # (1, tile_f)
    ex2 = jnp.sum(y * y, axis=0, keepdims=True) * inv_n              # E[y^2]
    var = jnp.maximum(ex2 - mean * mean, 0.0)
    inv_std = lax.rsqrt(var + BN_EPS)
    scale = g_ref[...] * inv_std
    shift = beta_ref[...] - mean * scale
    o_ref[...] = (y * scale + shift).astype(o_ref.dtype)


def _linear_stats_kernel(x_ref, w_ref, y_ref, psum_ref, psq_ref, acc_ref):
    """Two-pass path, pass 1: y = X @ W^T plus per-(N tile, channel) partial sums.

    Grid: (N tiles [parallel], out_f tiles [parallel], K tiles [arbitrary]).
    """
    k = pl.program_id(2)
    prod = jnp.dot(x_ref[...], w_ref[...], preferred_element_type=jnp.float32)

    @pl.when(k == 0)
    def _():
        acc_ref[...] = prod                       # no zero-init pass / first RMW load

    @pl.when(k > 0)
    def _():
        acc_ref[...] = acc_ref[...] + prod

    @pl.when(k == pl.num_programs(2) - 1)
    def _():
        y = acc_ref[...]
        y_ref[...] = y
        tf = y.shape[1]
        psum_ref[...] = jnp.sum(y, axis=0, keepdims=True).reshape(1, 1, tf)
        psq_ref[...] = jnp.sum(y * y, axis=0, keepdims=True).reshape(1, 1, tf)


def _normalize_kernel(y_ref, scale_ref, shift_ref, o_ref):
    """Two-pass path, pass 2: elementwise per-channel scale/shift."""
    o_ref[...] = (y_ref[...] * scale_ref[...] + shift_ref[...]).astype(o_ref.dtype)


# ---------------------------------------------------------------------------
# Wrapper
# ---------------------------------------------------------------------------

def _round_up(x, m):
    return (x + m - 1) // m * m


def _vmem_budget_bytes():
    try:
        cap = int(pltpu.get_tpu_info().vmem_capacity_bytes)
    except Exception:
        cap = 64 << 20          # conservative: v7x physical VMEM per core
    return int(cap * 0.8)       # leave runtime headroom (~51 MiB v7x, ~102 MiB v5e/v6e)


def prepare_weight(weight, mxu_dtype=jnp.bfloat16):
    """Transpose + cast + lane-pad the (out_f, in_f) PyTorch weight once (static across
    calls). Pass the result to linear_with_bn(..., prepared_weight=...)."""
    out_f, in_f = weight.shape
    k_p, f_p = _round_up(in_f, 128), _round_up(out_f, 128)
    w_t = weight.T
    if mxu_dtype is not None:
        w_t = w_t.astype(mxu_dtype)
    if (k_p, f_p) != (in_f, out_f):
        w_t = jnp.pad(w_t, ((0, k_p - in_f), (0, f_p - out_f)))
    return w_t


def linear_with_bn(x, weight, bias, gamma, beta, *, mxu_dtype=jnp.bfloat16,
                   out_dtype=None, prepared_weight=None, force_two_pass=False,
                   tile_n=None, tile_k=None):
    """x: (S, B, in_f); weight: (out_f, in_f) (PyTorch layout); bias/gamma/beta: (out_f,).

    mxu_dtype: MXU operand dtype (bf16 recommended on v6e/v7x); None keeps x.dtype.
    BN statistics / accumulation are always f32.
    """
    del bias  # Exactly cancels: BatchNorm with batch stats is invariant to per-channel constants.

    S, B, in_f = x.shape
    out_f = int(gamma.shape[0])
    N = S * B
    out_dtype = x.dtype if out_dtype is None else out_dtype

    op_dtype = jnp.dtype(mxu_dtype) if mxu_dtype is not None else jnp.dtype(x.dtype)
    mxu_bytes = op_dtype.itemsize
    out_bytes = jnp.dtype(out_dtype).itemsize

    K_p = _round_up(in_f, 128)
    F_p = _round_up(out_f, 128)
    f_pad = F_p - out_f
    # bf16 packs two rows per sublane: pad rows to the native (16,128) tile ((8,128) for f32).
    row_base = 16 if mxu_bytes == 2 else 8

    # Cast before padding (fewer bytes through the pad); run the whole wrapper under jax.jit
    # to fuse pad+cast into one HBM pass.
    x2d = x.reshape(N, in_f)
    if x2d.dtype != op_dtype:
        x2d = x2d.astype(op_dtype)

    w_t = prepare_weight(weight, mxu_dtype) if prepared_weight is None else prepared_weight
    assert w_t.shape == (K_p, F_p), f"prepared weight must be {(K_p, F_p)}, got {w_t.shape}"

    g2d = jnp.pad(gamma.astype(jnp.float32), (0, f_pad)).reshape(1, F_p)
    beta2d = jnp.pad(beta.astype(jnp.float32), (0, f_pad)).reshape(1, F_p)

    # Channel tile: 256 matches the v6e/v7x MXU; keep it even when F_p==256 because v7x
    # megacore parallelism comes from the (parallel) N-tile axis in the two-pass path.
    tile_f = 256 if F_p % 256 == 0 else 128
    budget = _vmem_budget_bytes()
    inv_n = 1.0 / float(N)

    # ---------------- fused single-pass path (X fully VMEM-resident) -------------------
    N_fused = _round_up(N, row_base)
    fused_est = (2 * N_fused * K_p * mxu_bytes        # X (double-buffered, loaded once)
                 + 2 * K_p * tile_f * mxu_bytes       # W tile
                 + 2 * N_fused * tile_f * out_bytes   # output tile
                 + 2 * N_fused * tile_f * 4           # f32 y + epilogue temps
                 + 16 * tile_f * 4)
    use_fused = (not force_two_pass) and fused_est <= (budget * 3) // 5

    if use_fused:
        xp = x2d
        if (N_fused, K_p) != (N, in_f):
            xp = jnp.pad(xp, ((0, N_fused - N), (0, K_p - in_f)))
        out2d = pl.pallas_call(
            functools.partial(_fused_kernel, inv_n=inv_n),
            out_shape=jax.ShapeDtypeStruct((N_fused, F_p), out_dtype),
            grid_spec=pltpu.PrefetchScalarGridSpec(
                num_scalar_prefetch=0,
                grid=(F_p // tile_f,),
                in_specs=[
                    pl.BlockSpec((N_fused, K_p), lambda j: (0, 0)),   # X: loaded once, resident
                    pl.BlockSpec((K_p, tile_f), lambda j: (0, j)),    # W^T
                    pl.BlockSpec((1, tile_f), lambda j: (0, j)),      # gamma
                    pl.BlockSpec((1, tile_f), lambda j: (0, j)),      # beta
                ],
                out_specs=pl.BlockSpec((N_fused, tile_f), lambda j: (0, j)),
            ),
            compiler_params=pltpu.CompilerParams(
                dimension_semantics=("parallel",),
                vmem_limit_bytes=int(min(budget, max(2 * fused_est, 32 << 20)))),
        )(xp, w_t, g2d, beta2d)
        return out2d[:N, :out_f].reshape(S, B, out_f)

    # ---------------- N-tiled two-pass path ---------------------------------------------
    if tile_n is None:
        tile_n = min(_round_up(N, row_base), 512)
    tile_n = _round_up(tile_n, row_base)
    N_p = _round_up(N, tile_n)

    if tile_k is None:
        tile_k = K_p if K_p <= 2048 else next(
            t for t in (2048, 1024, 512, 256, 128) if K_p % t == 0)
    assert tile_k % 128 == 0 and K_p % tile_k == 0

    n_i, n_j, n_k = N_p // tile_n, F_p // tile_f, K_p // tile_k

    xp = x2d
    if (N_p, K_p) != (N, in_f):
        xp = jnp.pad(xp, ((0, N_p - N), (0, K_p - in_f)))

    p1_est = (2 * tile_n * tile_k * mxu_bytes + 2 * tile_k * tile_f * mxu_bytes
              + 2 * tile_n * tile_f * 4 + tile_n * tile_f * 4 + 32 * tile_f * 4)
    p2_est = (2 * tile_n * tile_f * 4 + 2 * tile_n * tile_f * out_bytes + 16 * tile_f * 4)
    vmem_limit = int(min(budget, max(2 * max(p1_est, p2_est), 32 << 20)))

    # Pass 1: Linear + partial per-channel sum / sum-of-squares (single sweep over y).
    y2d, psum, psq = pl.pallas_call(
        _linear_stats_kernel,
        out_shape=(
            jax.ShapeDtypeStruct((N_p, F_p), jnp.float32),
            jax.ShapeDtypeStruct((n_i, 1, F_p), jnp.float32),
            jax.ShapeDtypeStruct((n_i, 1, F_p), jnp.float32),
        ),
        grid_spec=pltpu.PrefetchScalarGridSpec(
            num_scalar_prefetch=0,
            grid=(n_i, n_j, n_k),
            in_specs=[
                pl.BlockSpec((tile_n, tile_k), lambda i, j, k: (i, k)),   # X
                pl.BlockSpec((tile_k, tile_f), lambda i, j, k: (k, j)),   # W^T
            ],
            out_specs=(
                pl.BlockSpec((tile_n, tile_f), lambda i, j, k: (i, j)),   # y (f32)
                pl.BlockSpec((1, 1, tile_f), lambda i, j, k: (i, 0, j)),  # partial sum
                pl.BlockSpec((1, 1, tile_f), lambda i, j, k: (i, 0, j)),  # partial sumsq
            ),
            scratch_shapes=[pltpu.VMEM((tile_n, tile_f), jnp.float32)],
        ),
        compiler_params=pltpu.CompilerParams(
            dimension_semantics=("parallel", "parallel", "arbitrary"),
            vmem_limit_bytes=vmem_limit),
    )(xp, w_t)

    # Tiny O(out_f) reductions + BN affine folding (negligible vs the main kernels).
    mean = jnp.sum(psum, axis=0)[0] * inv_n                            # (F_p,)
    var = jnp.maximum(jnp.sum(psq, axis=0)[0] * inv_n - mean * mean, 0.0)
    inv_std = lax.rsqrt(var + BN_EPS)
    scale_row = g2d[0] * inv_std
    shift_row = beta2d[0] - mean * scale_row

    # Pass 2: streaming normalize (both axes parallel -> v7x megacore friendly).
    out2d = pl.pallas_call(
        _normalize_kernel,
        out_shape=jax.ShapeDtypeStruct((N_p, F_p), out_dtype),
        grid_spec=pltpu.PrefetchScalarGridSpec(
            num_scalar_prefetch=0,
            grid=(n_i, n_j),
            in_specs=[
                pl.BlockSpec((tile_n, tile_f), lambda i, j: (i, j)),
                pl.BlockSpec((1, tile_f), lambda i, j: (0, j)),
                pl.BlockSpec((1, tile_f), lambda i, j: (0, j)),
            ],
            out_specs=pl.BlockSpec((tile_n, tile_f), lambda i, j: (i, j)),
        ),
        compiler_params=pltpu.CompilerParams(
            dimension_semantics=("parallel", "parallel"),
            vmem_limit_bytes=vmem_limit),
    )(y2d, scale_row.reshape(1, F_p), shift_row.reshape(1, F_p))

    return out2d[:N, :out_f].reshape(S, B, out_f)


def reference(x, weight, bias, gamma, beta):
    """Pure-JAX reference mirroring the PyTorch module (batch stats, biased var)."""
    y = jnp.einsum("sbi,oi->sbo", x, weight) + bias
    mean = jnp.mean(y, axis=(0, 1), keepdims=True)
    var = jnp.mean((y - mean) ** 2, axis=(0, 1), keepdims=True)
    return (y - mean) / jnp.sqrt(var + BN_EPS) * gamma + beta


if __name__ == "__main__":
    def make_inputs(key, S, B, in_f, out_f):
        kx, kw, kb, kg, kbe = jax.random.split(key, 5)
        x = jax.random.normal(kx, (S, B, in_f), dtype=jnp.float32)
        bound = 1.0 / (in_f ** 0.5)
        weight = jax.random.uniform(kw, (out_f, in_f), jnp.float32, -bound, bound)
        bias = jax.random.uniform(kb, (out_f,), jnp.float32, -bound, bound)
        gamma = 1.0 + 0.1 * jax.random.normal(kg, (out_f,), dtype=jnp.float32)
        beta = 0.1 * jax.random.normal(kbe, (out_f,), dtype=jnp.float32)
        return x, weight, bias, gamma, beta

    # --- small shape: fused single-pass path (X VMEM-resident) -----------------------
    S, B, in_f, out_f = 8, 2, 32, 32
    x, weight, bias, gamma, beta = make_inputs(jax.random.PRNGKey(0), S, B, in_f, out_f)
    ref = reference(x, weight, bias, gamma, beta)

    out_f32 = jax.block_until_ready(
        linear_with_bn(x, weight, bias, gamma, beta, mxu_dtype=None))
    assert out_f32.shape == (S, B, out_f)
    assert jnp.allclose(out_f32, ref, atol=1e-4, rtol=1e-4), "fused f32 path mismatch"

    out_bf16 = jax.block_until_ready(
        linear_with_bn(x, weight, bias, gamma, beta, mxu_dtype=jnp.bfloat16))
    assert out_bf16.shape == (S, B, out_f)
    assert jnp.allclose(out_bf16, ref, atol=5e-2, rtol=5e-2), "fused bf16 path mismatch"

    # --- N-tiled two-pass path, forced, with a multi-tile grid over N / out_f / K -----
    S2, B2, in2, outf2 = 24, 8, 256, 320     # N=192 -> 3 N tiles; 2 K tiles; 3 channel tiles
    x2, w2, b2, g2, be2 = make_inputs(jax.random.PRNGKey(1), S2, B2, in2, outf2)
    ref2 = reference(x2, w2, b2, g2, be2)

    out2_f32 = jax.block_until_ready(
        linear_with_bn(x2, w2, b2, g2, be2, mxu_dtype=None,
                       force_two_pass=True, tile_n=64, tile_k=128))
    assert out2_f32.shape == (S2, B2, outf2)
    assert jnp.allclose(out2_f32, ref2, atol=2e-2, rtol=2e-2), "two-pass f32 path mismatch"

    out2_bf16 = jax.block_until_ready(
        linear_with_bn(x2, w2, b2, g2, be2, mxu_dtype=jnp.bfloat16,
                       force_two_pass=True, tile_n=64, tile_k=128,
                       prepared_weight=prepare_weight(w2, jnp.bfloat16)))
    assert out2_bf16.shape == (S2, B2, outf2)
    assert jnp.allclose(out2_bf16, ref2, atol=6e-2, rtol=6e-2), "two-pass bf16 path mismatch"

    print("KERNEL_OK")
</pallas_src>

<mosaic_0001>
module attributes {stable_mosaic.version = 11 : i64} {
  func.func @_fused_kernel(%arg0: i32, %arg1: memref<16x128xf32, #tpu.memory_space<vmem>>, %arg2: memref<128x128xf32, #tpu.memory_space<vmem>>, %arg3: memref<1x128xf32, #tpu.memory_space<vmem>>, %arg4: memref<1x128xf32, #tpu.memory_space<vmem>>, %arg5: memref<16x128xf32, #tpu.memory_space<vmem>>) attributes {dimension_semantics = [#tpu.dimension_semantics<parallel>], iteration_bounds = array<i64: 1>, scalar_prefetch = 0 : i64, scratch_operands = 0 : i64, tpu.core_type = #tpu.core_type<tc>, window_params = [{pipeline_mode = #tpu.pipeline_mode<synchronous>, transform_indices = @transform_0, window_bounds = array<i64: 16, 128>}, {transform_indices = @transform_1, window_bounds = array<i64: 128, 128>}, {transform_indices = @transform_2, window_bounds = array<i64: 1, 128>}, {transform_indices = @transform_3, window_bounds = array<i64: 1, 128>}, {transform_indices = @transform_4, window_bounds = array<i64: 16, 128>}]} {
    %c0 = arith.constant 0 : index
    %c0_0 = arith.constant 0 : index
    %0 = vector.load %arg1[%c0, %c0_0] : memref<16x128xf32, #tpu.memory_space<vmem>>, vector<16x128xf32>
    %c0_1 = arith.constant 0 : index
    %c0_2 = arith.constant 0 : index
    %1 = vector.load %arg2[%c0_1, %c0_2] : memref<128x128xf32, #tpu.memory_space<vmem>>, vector<128x128xf32>
    %cst = arith.constant dense<0.000000e+00> : vector<16x128xf32>
    %2 = tpu.matmul %0, %1, %cst {dimension_numbers = #tpu.dot_dimension_numbers<[1], [0], [0], [1], [0, 0, 1, 1], [], []>} : vector<16x128xf32>, vector<128x128xf32>, vector<16x128xf32> -> vector<16x128xf32>
    %cst_3 = arith.constant dense<0.000000e+00> : vector<128xf32>
    %3 = vector.multi_reduction <add>, %2, %cst_3 [0] : vector<16x128xf32> to vector<128xf32>
    %4 = vector.shape_cast %3 : vector<128xf32> to vector<1x128xf32>
    %cst_4 = arith.constant 6.250000e-02 : f32
    %5 = vector.broadcast %cst_4 : f32 to vector<1x128xf32>
    %6 = arith.mulf %4, %5 : vector<1x128xf32>
    %7 = arith.mulf %2, %2 : vector<16x128xf32>
    %cst_5 = arith.constant dense<0.000000e+00> : vector<128xf32>
    %8 = vector.multi_reduction <add>, %7, %cst_5 [0] : vector<16x128xf32> to vector<128xf32>
    %9 = vector.shape_cast %8 : vector<128xf32> to vector<1x128xf32>
    %cst_6 = arith.constant 6.250000e-02 : f32
    %10 = vector.broadcast %cst_6 : f32 to vector<1x128xf32>
    %11 = arith.mulf %9, %10 : vector<1x128xf32>
    %12 = arith.mulf %6, %6 : vector<1x128xf32>
    %13 = arith.subf %11, %12 : vector<1x128xf32>
    %cst_7 = arith.constant 0.000000e+00 : f32
    %14 = vector.broadcast %cst_7 : f32 to vector<1x128xf32>
    %15 = arith.maximumf %13, %14 : vector<1x128xf32>
    %cst_8 = arith.constant 9.99999974E-6 : f32
    %16 = vector.broadcast %cst_8 : f32 to vector<1x128xf32>
    %17 = arith.addf %15, %16 : vector<1x128xf32>
    %18 = math.rsqrt %17 : vector<1x128xf32>
    %c0_9 = arith.constant 0 : index
    %c0_10 = arith.constant 0 : index
    %19 = vector.load %arg3[%c0_9, %c0_10] : memref<1x128xf32, #tpu.memory_space<vmem>>, vector<1x128xf32>
    %20 = arith.mulf %19, %18 : vector<1x128xf32>
    %c0_11 = arith.constant 0 : index
    %c0_12 = arith.constant 0 : index
    %21 = vector.load %arg4[%c0_11, %c0_12] : memref<1x128xf32, #tpu.memory_space<vmem>>, vector<1x128xf32>
    %22 = arith.mulf %6, %20 : vector<1x128xf32>
    %23 = arith.subf %21, %22 : vector<1x128xf32>
    %24 = vector.broadcast %20 : vector<1x128xf32> to vector<16x128xf32>
    %25 = arith.mulf %2, %24 : vector<16x128xf32>
    %26 = vector.broadcast %23 : vector<1x128xf32> to vector<16x128xf32>
    %27 = arith.addf %25, %26 : vector<16x128xf32>
    %c0_13 = arith.constant 0 : index
    %c0_14 = arith.constant 0 : index
    %28 = vector.load %arg5[%c0_13, %c0_14] : memref<16x128xf32, #tpu.memory_space<vmem>>, vector<16x128xf32>
    tpu.vector_store %arg5[%c0_13, %c0_14], %27 {strides = array<i32>} : memref<16x128xf32, #tpu.memory_space<vmem>>, vector<16x128xf32>,
    return
  }
  func.func @transform_0(%arg0: i32) -> (i32, i32) {
    %c0_i32 = arith.constant 0 : i32
    %c0_i32_0 = arith.constant 0 : i32
    %c0_i32_1 = arith.constant 0 : i32
    return %c0_i32, %c0_i32_0 : i32, i32
  }
  func.func @transform_1(%arg0: i32) -> (i32, i32) {
    %c0_i32 = arith.constant 0 : i32
    %c0_i32_0 = arith.constant 0 : i32
    return %c0_i32, %arg0 : i32, i32
  }
  func.func @transform_2(%arg0: i32) -> (i32, i32) {
    %c0_i32 = arith.constant 0 : i32
    %c0_i32_0 = arith.constant 0 : i32
    return %c0_i32, %arg0 : i32, i32
  }
  func.func @transform_3(%arg0: i32) -> (i32, i32) {
    %c0_i32 = arith.constant 0 : i32
    %c0_i32_0 = arith.constant 0 : i32
    return %c0_i32, %arg0 : i32, i32
  }
  func.func @transform_4(%arg0: i32) -> (i32, i32) {
    %c0_i32 = arith.constant 0 : i32
    %c0_i32_0 = arith.constant 0 : i32
    return %c0_i32, %arg0 : i32, i32
  }
}

</mosaic_0001>

<bundles_post_ra>
// kernel: tpu_custom_call.1
= control target key start
LH: loop header
LB: loop body
LE: loop exit
PB: predicated region body
PF: predicated region fallthrough
CT: control target
= control target key end

     0   :  { %9 = vsyncpa [#allocation3], 0  ;;  %s448_s0 = inlined_call_operand.hbm [shape: f32[16,128], index: 0, kind: input, shape index: {}]   ;;  %s449_s1 = inlined_call_operand.hbm [shape: f32[128,128], index: 1, kind: input, shape index: {}]   ;;  %s450_s2 = inlined_call_operand.vmem [shape: f32[1,128], index: 2, kind: input, shape index: {}]   ;;  %s451_s3 = inlined_call_operand.vmem [shape: f32[1,128], index: 3, kind: input, shape index: {}]   ;;  %s452_s4 = inlined_call_operand.hbm [shape: f32[16,128], index: 4, kind: output, shape index: {}]  }
   0x1   :  { %10 = vsyncpa [#allocation6], 0 }
   0x2   :  { %11 = vsyncpa [#allocation4], 0  ;;  %s367_s15 = smov [#allocation2]   ;;  %s295_s19 = scalar_lea.hbm %s448_s0, 256 }
   0x3   :  { %s17_s16 = sshll.u32 %s367_s15, 4  ;;  %p296_p0 = scmp.ne.s32.totalorder %s448_s0, %s295_s19  ;;  %s18_s16 = int_to_ptr.vmem [resolvable:$true] %s17_s16 }
   0x4   :  { %p299_p1 = scmp.lt.u32.totalorder %s295_s19, %s448_s0 }
   0x6   :  { %p301_p2 = pnand %p299_p1, %p296_p0 }
   0x8   :  { %304 = shalt.err (!%p301_p2)
}
   0x9   :  { %s305_s24 = scalar_lea.vmem %s18_s16, 256  ;;  %p310_p4 = scmp.lt.s32.totalorder %s18_s16, %s18_s16 }
   0xa   :  { %p306_p3 = scmp.ne.s32.totalorder %s18_s16, %s305_s24  ;;  %p311_p5 = scmp.lt.s32.totalorder %s305_s24, %s305_s24 }
   0xc   :  { %p312_p6 = por %p311_p5, %p310_p4 }
   0xe   :  { %p313_p7 = pnand %p312_p6, %p306_p3 }
  0x10   :  { %316 = shalt.err (!%p313_p7)
}
  0x11   :  { %s368_s25 = smov 128   ;;  %s369_s26 = smov 8  }
  0x12   :  { %23 = dma.hbm_to_vmem [thread:$0]  %s448_s0, 256, %s18_s16, [#allocation3], %s368_s25, %s368_s25, %s369_s26  }
  0x13   :  { %s370_s29 = smov [#allocation5]   ;;  %s317_s7 = scalar_lea.hbm %s449_s1, 2048 }
  0x14   :  { %s29_s30 = sshll.u32 %s370_s29, 4  ;;  %p318_p8 = scmp.ne.s32.totalorder %s449_s1, %s317_s7  ;;  %s30_s30 = int_to_ptr.vmem [resolvable:$true] %s29_s30 }
  0x15   :  { %p321_p9 = scmp.lt.u32.totalorder %s317_s7, %s449_s1 }
  0x17   :  { %p323_p10 = pnand %p321_p9, %p318_p8 }
  0x19   :  { %326 = shalt.err (!%p323_p10)
}
  0x1a   :  { %s327_s12 = scalar_lea.vmem %s30_s30, 2048  ;;  %p332_p12 = scmp.lt.s32.totalorder %s30_s30, %s30_s30 }
  0x1b   :  { %p328_p11 = scmp.ne.s32.totalorder %s30_s30, %s327_s12  ;;  %p333_p13 = scmp.lt.s32.totalorder %s327_s12, %s327_s12 }
  0x1d   :  { %p334_p0 = por %p333_p13, %p332_p12 }
  0x1f   :  { %p335_p1 = pnand %p334_p0, %p328_p11 }
  0x21   :  { %338 = shalt.err (!%p335_p1)
}
  0x22   :  { %35 = dma.hbm_to_vmem [thread:$0]  %s449_s1, 2048, %s30_s30, [#allocation6], %s368_s25, %s368_s25, %s369_s26  }
  0x23   :  { %361 = dma.done.wait [#allocation3], 256  }
  0x24   :  { %362 = vsyncadd [#allocation3], 4294967040 }
  0x25   :  { %363 = dma.done.wait [#allocation6], 2048  }
  0x26   :  { %364 = vsyncadd [#allocation6], 4294965248  ;;  %v48_v0 = vld [vmem:[#allocation5] sm:$0xff]  ;;  %v49_v1 = vld [vmem:[#allocation5 + $0x8] sm:$0xff]  ;;  %v168_v50 = vlaneseq  ;;  %s371_s17 = smov [#allocation7]  }
  0x27   :  { %v50_v2 = vld [vmem:[#allocation5 + $0x10] sm:$0xff]  ;;  %v256_v3 = vpack.c.bf16 %v49_v1, %v48_v0  ;;  %v51_v4 = vld [vmem:[#allocation5 + $0x18] sm:$0xff]  ;;  %v52_v6 = vld [vmem:[#allocation5 + $0x20] sm:$0xff]  ;;  %s190_s18 = sshll.u32 %s371_s17, 4  ;;  %s191_s18 = int_to_ptr.vmem [resolvable:$true] %s190_s18 }
  0x28   :  { %v260_v5 = vpack.c.bf16 %v51_v4, %v50_v2  ;;  %v53_v7 = vld [vmem:[#allocation5 + $0x28] sm:$0xff]  ;;  %v46_v9 = vld [vmem:[#allocation2] sm:$0xff]  ;;  %v55_v11 = vld [vmem:[#allocation5 + $0x38] sm:$0xff]  ;;  %v169_v51 = vshrl.u32 %v168_v50, 7  ;;  %p344_p3 = scmp.lt.s32.totalorder %s191_s18, %s191_s18 }
  0x29   :  { %257 = vmatprep.subr.bf16.mxu0 %v256_v3  ;;  %v264_v8 = vpack.c.bf16 %v53_v7, %v52_v6  ;;  %v54_v10 = vld [vmem:[#allocation5 + $0x30] sm:$0xff]  ;;  %253 = vmatprep.mubr.f32.mxu0 %v46_v9  ;;  %v56_v13 = vld [vmem:[#allocation5 + $0x40] sm:$0xff]  ;;  %v57_v14 = vld [vmem:[#allocation5 + $0x48] sm:$0xff] }
  0x2a   :  { %259 = vmatpush3.bf16.msra.mxu0 %v256_v3  ;;  %v268_v12 = vpack.c.bf16 %v55_v11, %v54_v10  ;;  %v272_v15 = vpack.c.bf16 %v57_v14, %v56_v13  ;;  %v58_v16 = vld [vmem:[#allocation5 + $0x50] sm:$0xff]  ;;  %v59_v17 = vld [vmem:[#allocation5 + $0x58] sm:$0xff]  ;;  %v60_v19 = vld [vmem:[#allocation5 + $0x60] sm:$0xff]  ;;  %v170_v53 = vsub.s32 0, %v169_v51 }
  0x2b   :  { %261 = vmatprep.subr.bf16.mxu0 %v260_v5  ;;  %v276_v18 = vpack.c.bf16 %v59_v17, %v58_v16  ;;  %v61_v20 = vld [vmem:[#allocation5 + $0x68] sm:$0xff]  ;;  %v62_v22 = vld [vmem:[#allocation5 + $0x70] sm:$0xff]  ;;  %v63_v23 = vld [vmem:[#allocation5 + $0x78] sm:$0xff] }
  0x2c   :  { %v280_v21 = vpack.c.bf16 %v61_v20, %v60_v19  ;;  %v284_v24 = vpack.c.bf16 %v63_v23, %v62_v22  ;;  %v47_v25 = vld [vmem:[#allocation2 + $0x8] sm:$0xff]  ;;  %v162_v52 = vld [vmem:[%s450_s2] sm:$0x1]  ;;  %s339_s2 = scalar_lea.vmem %s191_s18, 256 }
  0x2d   :  { %v164_v56 = vld [vmem:[%s451_s3] sm:$0x1]  ;;  %p340_p2 = scmp.ne.s32.totalorder %s191_s18, %s339_s2  ;;  %p345_p4 = scmp.lt.s32.totalorder %s339_s2, %s339_s2 }
  0x2e   :  { %263 = vmatpush3.bf16.msra.mxu0 %v260_v5 }
  0x2f   :  { %265 = vmatprep.subr.bf16.mxu0 %v264_v8  ;;  %p346_p5 = por %p345_p4, %p344_p3 }
  0x31   :  { %p347_p6 = pnand %p346_p5, %p340_p2 }
  0x32   :  { %267 = vmatpush3.bf16.msra.mxu0 %v264_v8 }
  0x33   :  { %269 = vmatprep.subr.bf16.mxu0 %v268_v12 }
  0x36   :  { %271 = vmatpush3.bf16.msra.mxu0 %v268_v12 }
  0x37   :  { %273 = vmatprep.subr.bf16.mxu0 %v272_v15 }
  0x3a   :  { %275 = vmatpush3.bf16.msra.mxu0 %v272_v15 }
  0x3b   :  { %277 = vmatprep.subr.bf16.mxu0 %v276_v18 }
  0x3e   :  { %279 = vmatpush3.bf16.msra.mxu0 %v276_v18 }
  0x3f   :  { %281 = vmatprep.subr.bf16.mxu0 %v280_v21 }
  0x42   :  { %283 = vmatpush3.bf16.msra.mxu0 %v280_v21 }
  0x43   :  { %285 = vmatprep.subr.bf16.mxu0 %v284_v24 }
  0x46   :  { %287 = vmatpush3.bf16.msra.mxu0 %v284_v24 }
  0x49   :  { %254 = vmatmul.mubr.f32.vlgmr.msra.gmra.mrb[0].mxu0 %v47_v25 }
 0x11c   :  { %v255_v26 = vpop.f32.mrb[0].mxu0 }
 0x11d   :  { %v148_v27 = vmul.f32 %v255_v26, %v255_v26  ;;  %v130_v28 = vpop.f32.mrb[1].mxu0 }
 0x11e   :  { %v139_v29 = vadd.f32 %v255_v26, %v130_v28  ;;  %v147_v30 = vmul.f32 %v130_v28, %v130_v28 }
 0x120   :  { %v140_v31 = vrot.slane %v139_v29, 4  ;;  %v149_v32 = vadd.f32 %v148_v27, %v147_v30 }
 0x122   :  { %v141_v33 = vadd.f32 %v140_v31, %v139_v29  ;;  %v150_v34 = vrot.slane %v149_v32, 4 }
 0x124   :  { %v142_v35 = vrot.slane %v141_v33, 2  ;;  %v151_v36 = vadd.f32 %v150_v34, %v149_v32 }
 0x126   :  { %v143_v37 = vadd.f32 %v142_v35, %v141_v33  ;;  %v152_v38 = vrot.slane %v151_v36, 2 }
 0x128   :  { %v144_v39 = vrot.slane %v143_v37, 1  ;;  %v153_v40 = vadd.f32 %v152_v38, %v151_v36 }
 0x12a   :  { %v145_v41 = vadd.f32 %v144_v39, %v143_v37  ;;  %v154_v42 = vrot.slane %v153_v40, 1 }
 0x12c   :  { %v146_v43 = vmul.f32 0.0625, %v145_v41  ;;  %v155_v44 = vadd.f32 %v154_v42, %v153_v40 }
 0x12e   :  { %v156_v45 = vmul.f32 0.0625, %v155_v44  ;;  %v157_v46 = vmul.f32 %v146_v43, %v146_v43 }
 0x130   :  { %v158_v47 = vsub.f32 %v156_v45, %v157_v46 }
 0x132   :  { %v159_v48 = vmax.f32 %v158_v47, 0.0 }
 0x134   :  { %v160_v49 = vadd.f32 1e-05, %v159_v48 }
 0x136   :  { %293 = vrsqrt.f32 %v160_v49 }
 0x140   :  { %v294_v54 = vpop.eup %293 }
 0x141   :  { %v163_v55 = vmul.f32 %v294_v54, %v162_v52 }
 0x143   :  { %v165_v57 = vmul.f32 %v163_v55, %v146_v43  ;;  %v171_v58 = vrot.slane %v163_v55, %v170_v53 }
 0x145   :  { %v166_v59 = vsub.f32 %v164_v56, %v165_v57  ;;  %v173_v60 = vmul.f32 %v171_v58, %v130_v28  ;;  %v174_v61 = vmul.f32 %v255_v26, %v171_v58 }
 0x147   :  { %v179_v62 = vrot.slane %v166_v59, %v170_v53 }
 0x149   :  { %v181_v63 = vadd.f32 %v179_v62, %v173_v60  ;;  %v182_v0 = vadd.f32 %v179_v62, %v174_v61 }
 0x14b   :  { %183 = vst [vmem:[#allocation7] sm:$0xff] %v181_v63  ;;  %184 = vst [vmem:[#allocation7 + $0x8] sm:$0xff] %v182_v0 }
 0x14c   :  { %350 = shalt.err (!%p347_p6)
}
 0x14d   :  { %s351_s20 = scalar_lea.hbm %s452_s4, 256 }
 0x14e   :  { %p352_p7 = scmp.ne.s32.totalorder %s452_s4, %s351_s20  ;;  %p355_p8 = scmp.lt.u32.totalorder %s351_s20, %s452_s4 }
 0x150   :  { %p357_p9 = pnand %p355_p8, %p352_p7 }
 0x152   :  { %360 = shalt.err (!%p357_p9)
}
 0x153   :  { %196 = dma.vmem_to_hbm [thread:$0]  %s191_s18, 256, %s452_s4, [#allocation4], %s368_s25, %s368_s25, %s369_s26  }
 0x154   :  { %365 = dma.done.wait [#allocation4], 256  }
 0x155   :  { %366 = vsyncadd [#allocation4], 4294967040 }
 0x156   :  { %200 = vsyncpa [#allocation3], 1 }
 0x157   :  { %201 = vsyncpa [#allocation6], 1 }
 0x158   :  { %202 = vsyncpa [#allocation4], 1 }

</bundles_post_ra>
